<compile_context>
chip_gen: v6e
topology: v6e:2x2x1
jax: 0.10.0
libtpu: 0.0.40
codegen_flags: <defaults>
</compile_context>

<pallas_src>
import functools

import jax
import jax.numpy as jnp
import numpy as np
from jax.experimental import pallas as pl
from jax.experimental.pallas import tpu as pltpu

IN_DIM = 28 * 28  # 784 — fixed feature dim of the autoencoder


def _round_up(x, m):
    return (x + m - 1) // m * m


def _choose_tile_b(batch):
    """Pick a batch tile: >= ~8 grid steps for pipelining, multiple of 8,
    capped at 512 rows so double-buffered f32 tiles stay well under VMEM."""
    t = _round_up(max(pl.cdiv(batch, 8), 8), 8)
    return int(min(t, 512))


def autoencoder_kernel(x_ref, w1_ref, b1_ref, w2_ref, b2_ref, o_ref):
    # hidden = relu(x @ W1 + b1); bf16 operands, f32 accumulate on the MXU.
    x = x_ref[...].astype(jnp.bfloat16)
    h = jnp.dot(x, w1_ref[...], preferred_element_type=jnp.float32)
    h = jnp.maximum(h + b1_ref[...], 0.0)
    # out = sigmoid(h @ W2 + b2)
    y = jnp.dot(h.astype(jnp.bfloat16), w2_ref[...],
                preferred_element_type=jnp.float32)
    y = y + b2_ref[...]
    # Stable sigmoid with a single EUP transcendental: sig(y) = 0.5*tanh(y/2)+0.5
    o_ref[...] = (0.5 * jnp.tanh(0.5 * y) + 0.5).astype(o_ref.dtype)


def autoencoder_forward(x, w1, b1, w2, b2):
    """Fused fc1 -> ReLU -> fc2 -> sigmoid.

    x : (B, 784) float32
    w1: (784, E), b1: (1, E), w2: (E, 784), b2: (1, 784)
    (weights are the transpose of PyTorch nn.Linear's (out, in) layout).
    Returns (B, 784) float32.
    """
    B, D = x.shape
    E = w1.shape[1]
    assert D == IN_DIM and w1.shape == (IN_DIM, E)
    assert w2.shape == (E, IN_DIM) and b1.shape == (1, E) and b2.shape == (1, IN_DIM)

    tile_b = _choose_tile_b(B)
    B_pad = _round_up(B, tile_b)

    # Only pad the batch if it is ragged w.r.t. the tile; features stay 784.
    x_in = x if B_pad == B else jnp.zeros((B_pad, D), x.dtype).at[:B].set(x)

    # Tiny one-time casts (weights ~100 KB); biases stay f32 for the VPU adds.
    w1b = w1.astype(jnp.bfloat16)
    w2b = w2.astype(jnp.bfloat16)
    b1f = b1.astype(jnp.float32)
    b2f = b2.astype(jnp.float32)

    grid = (B_pad // tile_b,)
    const = lambda i: (0, 0)  # weights/biases: same (only) block every grid step

    out = pl.pallas_call(
        autoencoder_kernel,
        out_shape=jax.ShapeDtypeStruct((B_pad, IN_DIM), jnp.float32),
        grid_spec=pltpu.PrefetchScalarGridSpec(
            num_scalar_prefetch=0,
            grid=grid,
            in_specs=[
                pl.BlockSpec((tile_b, IN_DIM), lambda i: (i, 0)),  # x tile (f32)
                pl.BlockSpec((IN_DIM, E), const),                  # W1 (resident)
                pl.BlockSpec((1, E), const),                       # b1
                pl.BlockSpec((E, IN_DIM), const),                  # W2 (resident)
                pl.BlockSpec((1, IN_DIM), const),                  # b2
            ],
            out_specs=pl.BlockSpec((tile_b, IN_DIM), lambda i: (i, 0)),
        ),
        compiler_params=pltpu.CompilerParams(
            dimension_semantics=("parallel",),   # batch tiles are independent
            vmem_limit_bytes=32 * 1024 * 1024,   # lift v5e's 16 MiB scoped default
        ),
    )(x_in, w1b, b1f, w2b, b2f)

    return out if B_pad == B else out[:B]


def init_params(key, encoding_dim):
    """Deterministic init mirroring nn.Linear's U(-1/sqrt(fan_in), 1/sqrt(fan_in))."""
    k1, k2, k3, k4 = jax.random.split(key, 4)
    lim1 = 1.0 / np.sqrt(IN_DIM)
    lim2 = 1.0 / np.sqrt(encoding_dim)
    w1 = jax.random.uniform(k1, (IN_DIM, encoding_dim), jnp.float32, -lim1, lim1)
    b1 = jax.random.uniform(k2, (1, encoding_dim), jnp.float32, -lim1, lim1)
    w2 = jax.random.uniform(k3, (encoding_dim, IN_DIM), jnp.float32, -lim2, lim2)
    b2 = jax.random.uniform(k4, (1, IN_DIM), jnp.float32, -lim2, lim2)
    return w1, b1, w2, b2


if __name__ == "__main__":
    key = jax.random.PRNGKey(0)
    k_x, k_p = jax.random.split(key)

    batch = 8             # small demo batch; tile_b adapts (here: single tile)
    encoding_dim = 32

    x = jax.random.uniform(k_x, (batch, IN_DIM), jnp.float32)  # MNIST-like pixels
    w1, b1, w2, b2 = init_params(k_p, encoding_dim)

    fwd = jax.jit(autoencoder_forward)   # whole forward fuses; no extra HBM passes
    out = jax.block_until_ready(fwd(x, w1, b1, w2, b2))

    # Pure-JAX f32 reference (same math as the PyTorch forward).
    h_ref = jnp.maximum(x @ w1 + b1, 0.0)
    y_ref = jax.nn.sigmoid(h_ref @ w2 + b2)
    # bf16 matmul operands => looser tolerance.
    np.testing.assert_allclose(np.asarray(out), np.asarray(y_ref),
                               rtol=2e-2, atol=2e-2)

    print("KERNEL_OK")
</pallas_src>

<mosaic_0001>
module attributes {stable_mosaic.version = 11 : i64} {
  func.func @autoencoder_kernel(%arg0: i32, %arg1: memref<8x784xf32, #tpu.memory_space<vmem>>, %arg2: memref<784x32xbf16, #tpu.memory_space<vmem>>, %arg3: memref<1x32xf32, #tpu.memory_space<vmem>>, %arg4: memref<32x784xbf16, #tpu.memory_space<vmem>>, %arg5: memref<1x784xf32, #tpu.memory_space<vmem>>, %arg6: memref<8x784xf32, #tpu.memory_space<vmem>>) attributes {dimension_semantics = [#tpu.dimension_semantics<parallel>], iteration_bounds = array<i64: 1>, scalar_prefetch = 0 : i64, scratch_operands = 0 : i64, tpu.core_type = #tpu.core_type<tc>, window_params = [{transform_indices = @transform_0, window_bounds = array<i64: 8, 784>}, {pipeline_mode = #tpu.pipeline_mode<synchronous>, transform_indices = @transform_1, window_bounds = array<i64: 784, 32>}, {pipeline_mode = #tpu.pipeline_mode<synchronous>, transform_indices = @transform_2, window_bounds = array<i64: 1, 32>}, {pipeline_mode = #tpu.pipeline_mode<synchronous>, transform_indices = @transform_3, window_bounds = array<i64: 32, 784>}, {pipeline_mode = #tpu.pipeline_mode<synchronous>, transform_indices = @transform_4, window_bounds = array<i64: 1, 784>}, {transform_indices = @transform_5, window_bounds = array<i64: 8, 784>}]} {
    %c0 = arith.constant 0 : index
    %c0_0 = arith.constant 0 : index
    %0 = vector.load %arg1[%c0, %c0_0] : memref<8x784xf32, #tpu.memory_space<vmem>>, vector<8x784xf32>
    %1 = arith.truncf %0 : vector<8x784xf32> to vector<8x784xbf16>
    %c0_1 = arith.constant 0 : index
    %c0_2 = arith.constant 0 : index
    %2 = vector.load %arg2[%c0_1, %c0_2] : memref<784x32xbf16, #tpu.memory_space<vmem>>, vector<784x32xbf16>
    %cst = arith.constant dense<0.000000e+00> : vector<8x32xf32>
    %3 = tpu.matmul %1, %2, %cst {dimension_numbers = #tpu.dot_dimension_numbers<[1], [0], [0], [1], [0, 0, 1, 1], [], []>} : vector<8x784xbf16>, vector<784x32xbf16>, vector<8x32xf32> -> vector<8x32xf32>
    %c0_3 = arith.constant 0 : index
    %c0_4 = arith.constant 0 : index
    %4 = vector.load %arg3[%c0_3, %c0_4] : memref<1x32xf32, #tpu.memory_space<vmem>>, vector<1x32xf32>
    %5 = vector.broadcast %4 : vector<1x32xf32> to vector<8x32xf32>
    %6 = arith.addf %3, %5 : vector<8x32xf32>
    %cst_5 = arith.constant 0.000000e+00 : f32
    %7 = vector.broadcast %cst_5 : f32 to vector<8x32xf32>
    %8 = arith.maximumf %6, %7 : vector<8x32xf32>
    %9 = arith.truncf %8 : vector<8x32xf32> to vector<8x32xbf16>
    %c0_6 = arith.constant 0 : index
    %c0_7 = arith.constant 0 : index
    %10 = vector.load %arg4[%c0_6, %c0_7] : memref<32x784xbf16, #tpu.memory_space<vmem>>, vector<32x784xbf16>
    %cst_8 = arith.constant dense<0.000000e+00> : vector<8x784xf32>
    %11 = tpu.matmul %9, %10, %cst_8 {dimension_numbers = #tpu.dot_dimension_numbers<[1], [0], [0], [1], [0, 0, 1, 1], [], []>} : vector<8x32xbf16>, vector<32x784xbf16>, vector<8x784xf32> -> vector<8x784xf32>
    %c0_9 = arith.constant 0 : index
    %c0_10 = arith.constant 0 : index
    %12 = vector.load %arg5[%c0_9, %c0_10] : memref<1x784xf32, #tpu.memory_space<vmem>>, vector<1x784xf32>
    %13 = vector.broadcast %12 : vector<1x784xf32> to vector<8x784xf32>
    %14 = arith.addf %11, %13 : vector<8x784xf32>
    %cst_11 = arith.constant 5.000000e-01 : f32
    %15 = vector.broadcast %cst_11 : f32 to vector<8x784xf32>
    %16 = arith.mulf %15, %14 : vector<8x784xf32>
    %17 = math.tanh %16 : vector<8x784xf32>
    %cst_12 = arith.constant 5.000000e-01 : f32
    %18 = vector.broadcast %cst_12 : f32 to vector<8x784xf32>
    %19 = arith.mulf %18, %17 : vector<8x784xf32>
    %cst_13 = arith.constant 5.000000e-01 : f32
    %20 = vector.broadcast %cst_13 : f32 to vector<8x784xf32>
    %21 = arith.addf %19, %20 : vector<8x784xf32>
    %c0_14 = arith.constant 0 : index
    %c0_15 = arith.constant 0 : index
    %22 = vector.load %arg6[%c0_14, %c0_15] : memref<8x784xf32, #tpu.memory_space<vmem>>, vector<8x784xf32>
    tpu.vector_store %arg6[%c0_14, %c0_15], %21 {strides = array<i32>} : memref<8x784xf32, #tpu.memory_space<vmem>>, vector<8x784xf32>,
    return
  }
  func.func @transform_0(%arg0: i32) -> (i32, i32) {
    %c0_i32 = arith.constant 0 : i32
    %c0_i32_0 = arith.constant 0 : i32
    return %arg0, %c0_i32 : i32, i32
  }
  func.func @transform_1(%arg0: i32) -> (i32, i32) {
    %c0_i32 = arith.constant 0 : i32
    %c0_i32_0 = arith.constant 0 : i32
    %c0_i32_1 = arith.constant 0 : i32
    return %c0_i32, %c0_i32_0 : i32, i32
  }
  func.func @transform_2(%arg0: i32) -> (i32, i32) {
    %c0_i32 = arith.constant 0 : i32
    %c0_i32_0 = arith.constant 0 : i32
    %c0_i32_1 = arith.constant 0 : i32
    return %c0_i32, %c0_i32_0 : i32, i32
  }
  func.func @transform_3(%arg0: i32) -> (i32, i32) {
    %c0_i32 = arith.constant 0 : i32
    %c0_i32_0 = arith.constant 0 : i32
    %c0_i32_1 = arith.constant 0 : i32
    return %c0_i32, %c0_i32_0 : i32, i32
  }
  func.func @transform_4(%arg0: i32) -> (i32, i32) {
    %c0_i32 = arith.constant 0 : i32
    %c0_i32_0 = arith.constant 0 : i32
    %c0_i32_1 = arith.constant 0 : i32
    return %c0_i32, %c0_i32_0 : i32, i32
  }
  func.func @transform_5(%arg0: i32) -> (i32, i32) {
    %c0_i32 = arith.constant 0 : i32
    %c0_i32_0 = arith.constant 0 : i32
    return %arg0, %c0_i32 : i32, i32
  }
}

</mosaic_0001>

<bundles_post_ra>
// kernel: autoencoder_forward.1
= control target key start
LH: loop header
LB: loop body
LE: loop exit
PB: predicated region body
PF: predicated region fallthrough
CT: control target
= control target key end

     0   :  { %v1205_v44 = vmov 0.0   ;;  %vm1206_vm0 = vmmov 0   ;;  %vm435_vm1 = vcmask 130048   ;;  %s1466_s0 = inlined_call_operand.vmem [shape: f32[8,784], index: 0, kind: input, shape index: {}]   ;;  %s1467_s1 = inlined_call_operand.vmem [shape: bf16[784,32], index: 1, kind: input, shape index: {}]   ;;  %s1468_s2 = inlined_call_operand.vmem [shape: f32[1,32], index: 2, kind: input, shape index: {}]   ;;  %s1469_s3 = inlined_call_operand.vmem [shape: bf16[32,784], index: 3, kind: input, shape index: {}]   ;;  %s1470_s4 = inlined_call_operand.vmem [shape: f32[1,784], index: 4, kind: input, shape index: {}]   ;;  %s1471_s5 = inlined_call_operand.hbm [shape: f32[8,784], index: 5, kind: output, shape index: {}]  }
   0x1   :  { %v1100_v0 = vld [vmem:[%s1467_s1 + $0x78] sm:$0xff]   ;;  %v1104_v4 = vld [vmem:[%s1467_s1 + $0x70] sm:$0xff]   ;;  %v1108_v8 = vld [vmem:[%s1467_s1 + $0x68] sm:$0xff]  }
   0x2   :  { %v1101_v1 = vld [vmem:[%s1467_s1 + $0x38] sm:$0xff]   ;;  %1011 = vmatprep.subr.bf16.mxu0 %v1100_v0  ;;  %v1105_v5 = vld [vmem:[%s1467_s1 + $0x30] sm:$0xff]   ;;  %v1109_v9 = vld [vmem:[%s1467_s1 + $0x28] sm:$0xff]  }
   0x3   :  { %v1102_v2 = vld [vmem:[%s1467_s1 + $0xf8] sm:$0xff]   ;;  %1012 = vmatpush3.bf16.msra.mxu0 %v1101_v1  ;;  %v1106_v6 = vld [vmem:[%s1467_s1 + $0xf0] sm:$0xff]   ;;  %v1110_v10 = vld [vmem:[%s1467_s1 + $0xe8] sm:$0xff]  }
   0x4   :  { %v1103_v3 = vld [vmem:[%s1467_s1 + $0xb8] sm:$0xff]   ;;  %1033 = vmatprep.subr.bf16.mxu1 %v1102_v2  ;;  %1013 = vmatprep.subr.bf16.mxu0 %v1104_v4  ;;  %v1107_v7 = vld [vmem:[%s1467_s1 + $0xb0] sm:$0xff]   ;;  %v1111_v11 = vld [vmem:[%s1467_s1 + $0xa8] sm:$0xff]  }
   0x5   :  { %1034 = vmatpush3.bf16.msra.mxu1 %v1103_v3  ;;  %v1112_v12 = vld [vmem:[%s1467_s1 + $0x60] sm:$0xff]   ;;  %v1116_v16 = vld [vmem:[%s1467_s1 + $0x58] sm:$0xff]   ;;  %v1120_v20 = vld [vmem:[%s1467_s1 + $0x50] sm:$0xff]  }
   0x6   :  { %1035 = vmatprep.subr.bf16.mxu1 %v1106_v6  ;;  %v1113_v13 = vld [vmem:[%s1467_s1 + $0x20] sm:$0xff]   ;;  %v1117_v17 = vld [vmem:[%s1467_s1 + $0x18] sm:$0xff]   ;;  %v1121_v21 = vld [vmem:[%s1467_s1 + $0x10] sm:$0xff]  }
   0x7   :  { %1014 = vmatpush3.bf16.msra.mxu0 %v1105_v5  ;;  %v1114_v14 = vld [vmem:[%s1467_s1 + $0xe0] sm:$0xff]   ;;  %v1118_v18 = vld [vmem:[%s1467_s1 + $0xd8] sm:$0xff]   ;;  %v1122_v22 = vld [vmem:[%s1467_s1 + $0xd0] sm:$0xff]  }
   0x8   :  { %1015 = vmatprep.subr.bf16.mxu0 %v1108_v8  ;;  %v1115_v15 = vld [vmem:[%s1467_s1 + $0xa0] sm:$0xff]   ;;  %v1119_v19 = vld [vmem:[%s1467_s1 + $0x98] sm:$0xff]   ;;  %v1123_v23 = vld [vmem:[%s1467_s1 + $0x90] sm:$0xff]  }
   0x9   :  { %1036 = vmatpush3.bf16.msra.mxu1 %v1107_v7  ;;  %v1124_v24 = vld [vmem:[%s1467_s1 + $0x48] sm:$0xff]   ;;  %v1128_v28 = vld [vmem:[%s1467_s1 + $0x40] sm:$0xff]   ;;  %v1132_v36 = vld [vmem:[%s1467_s1 + $0x178] sm:$0xff]  }
   0xa   :  { %1037 = vmatprep.subr.bf16.mxu1 %v1110_v10  ;;  %v1125_v25 = vld [vmem:[%s1467_s1 + $0x8] sm:$0xff]   ;;  %v1129_v29 = vld [vmem:[%s1467_s1] sm:$0xff]   ;;  %v25_v37 = vld [vmem:[%s1466_s0 + $0x18] sm:$0xff] }
   0xb   :  { %1016 = vmatpush3.bf16.msra.mxu0 %v1109_v9  ;;  %v1126_v26 = vld [vmem:[%s1467_s1 + $0xc8] sm:$0xff]   ;;  %v1130_v30 = vld [vmem:[%s1467_s1 + $0xc0] sm:$0xff]   ;;  %v32_v38 = vpack.c.bf16 %v25_v37, %v25_v37  ;;  %v1133_v39 = vld [vmem:[%s1467_s1 + $0x138] sm:$0xff]  }
   0xc   :  { %1017 = vmatprep.subr.bf16.mxu0 %v1112_v12  ;;  %v1127_v27 = vld [vmem:[%s1467_s1 + $0x88] sm:$0xff]   ;;  %v1131_v33 = vld [vmem:[%s1467_s1 + $0x80] sm:$0xff]   ;;  %v24_v40 = vld [vmem:[%s1466_s0 + $0x10] sm:$0xff] }
   0xd   :  { %1038 = vmatpush3.bf16.msra.mxu1 %v1111_v11  ;;  %v23_v31 = vld [vmem:[%s1466_s0 + $0x8] sm:$0xff]  ;;  %v22_v34 = vld [vmem:[%s1466_s0] sm:$0xff]  ;;  %511 = vmatprep.mubr.bf16.mxu1 %v32_v38  ;;  %v31_v41 = vpack.c.bf16 %v24_v40, %v24_v40  ;;  %v1134_v42 = vld [vmem:[%s1467_s1 + $0x170] sm:$0xff]  }
   0xe   :  { %1039 = vmatprep.subr.bf16.mxu1 %v1114_v14  ;;  %v30_v32 = vpack.c.bf16 %v23_v31, %v23_v31  ;;  %v29_v35 = vpack.c.bf16 %v22_v34, %v22_v34  ;;  %v1135_v43 = vld [vmem:[%s1467_s1 + $0x130] sm:$0xff]   ;;  %v1136_v45 = vld [vmem:[%s1467_s1 + $0x168] sm:$0xff]   ;;  %v1138_v47 = vld [vmem:[%s1467_s1 + $0x160] sm:$0xff]  }
   0xf   :  { %1018 = vmatpush3.bf16.msra.mxu0 %v1113_v13  ;;  %v1137_v46 = vld [vmem:[%s1467_s1 + $0x128] sm:$0xff]   ;;  %v1139_v48 = vld [vmem:[%s1467_s1 + $0x120] sm:$0xff]   ;;  %v1140_v49 = vld [vmem:[%s1467_s1 + $0x158] sm:$0xff]  }
  0x10   :  { %1019 = vmatprep.subr.bf16.mxu0 %v1116_v16  ;;  %471 = vmatprep.mubr.bf16.mxu0 %v30_v32  ;;  %v1141_v50 = vld [vmem:[%s1467_s1 + $0x118] sm:$0xff]   ;;  %v1142_v51 = vld [vmem:[%s1467_s1 + $0x150] sm:$0xff]   ;;  %v1148_v53 = vld [vmem:[%s1467_s1 + $0x180] sm:$0xff]  }
  0x11   :  { %1040 = vmatpush3.bf16.msra.mxu1 %v1115_v15  ;;  %v1143_v52 = vld [vmem:[%s1467_s1 + $0x110] sm:$0xff]   ;;  %v27_v54 = vld [vmem:[%s1466_s0 + $0x28] sm:$0xff] }
  0x12   :  { %1041 = vmatprep.subr.bf16.mxu1 %v1118_v18  ;;  %v1144_v55 = vld [vmem:[%s1467_s1 + $0x148] sm:$0xff]   ;;  %v34_v56 = vpack.c.bf16 %v27_v54, %v27_v54  ;;  %v28_v57 = vld [vmem:[%s1466_s0 + $0x30] sm:$0xff] }
  0x13   :  { %1020 = vmatpush3.bf16.msra.mxu0 %v1117_v17  ;;  %v35_v58 = vpack.c.bf16 %v28_v57, %v28_v57  ;;  %v1145_v59 = vld [vmem:[%s1467_s1 + $0x108] sm:$0xff]  }
  0x14   :  { %1021 = vmatprep.subr.bf16.mxu0 %v1120_v20 }
  0x15   :  { %1042 = vmatpush3.bf16.msra.mxu1 %v1119_v19 }
  0x16   :  { %1043 = vmatprep.subr.bf16.mxu1 %v1122_v22 }
  0x17   :  { %1022 = vmatpush3.bf16.msra.mxu0 %v1121_v21 }
  0x18   :  { %1023 = vmatprep.subr.bf16.mxu0 %v1124_v24 }
  0x19   :  { %1044 = vmatpush3.bf16.msra.mxu1 %v1123_v23 }
  0x1a   :  { %1045 = vmatprep.subr.bf16.mxu1 %v1126_v26 }
  0x1b   :  { %1024 = vmatpush3.bf16.msra.mxu0 %v1125_v25 }
  0x1c   :  { %1025 = vmatprep.subr.bf16.mxu0 %v1128_v28 }
  0x1d   :  { %1046 = vmatpush3.bf16.msra.mxu1 %v1127_v27 }
  0x1e   :  { %1047 = vmatprep.subr.bf16.mxu1 %v1130_v30 }
  0x1f   :  { %1026 = vmatpush3.bf16.msra.mxu0 %v1129_v29 }
  0x20   :  { %1055 = vmatprep.subr.bf16.mxu0 %v1132_v36 }
  0x21   :  { %1048 = vmatpush3.bf16.msra.mxu1 %v1131_v33 }
  0x22   :  { %472 = vmatmul.mubr.bf16.vlgmr.msra.gmra.mxu0 %v29_v35  ;;  %1082 = vmatprep.subr.bf16.mxu1 %v1205_v44 }
  0x23   :  { %1056 = vmatpush3.bf16.msra.mxu0 %v1133_v39  ;;  %551 = vmatprep.mubr.bf16.mxu0 %v34_v56 }
  0x24   :  { %512 = vmatmul.mubr.bf16.vlgmr.msra.gmra.mxu1 %v31_v41  ;;  %1057 = vmatprep.subr.bf16.mxu0 %v1134_v42 }
  0x25   :  { %1084 = vmatprep.mubr.msk.bf16.mxu1 %vm1206_vm0, %v1205_v44  ;;  %1083 = vmatpush3.bf16.msra.mxu1 %v1148_v53 }
  0x27   :  { %1058 = vmatpush3.bf16.msra.mxu0 %v1135_v43 }
  0x28   :  { %1059 = vmatprep.subr.bf16.mxu0 %v1136_v45 }
  0x2b   :  { %1060 = vmatpush3.bf16.msra.mxu0 %v1137_v46 }
  0x2c   :  { %1061 = vmatprep.subr.bf16.mxu0 %v1138_v47  ;;  %1085 = vmatmul.mubr.msk.bf16.vlgmr.msra.gmra.mxu1 %vm435_vm1, %v35_v58 }
  0x2f   :  { %1062 = vmatpush3.bf16.msra.mxu0 %v1139_v48 }
  0x30   :  { %1063 = vmatprep.subr.bf16.mxu0 %v1140_v49 }
  0x33   :  { %1064 = vmatpush3.bf16.msra.mxu0 %v1141_v50 }
  0x34   :  { %1065 = vmatprep.subr.bf16.mxu0 %v1142_v51 }
  0x37   :  { %1066 = vmatpush3.bf16.msra.mxu0 %v1143_v52 }
  0x38   :  { %10 = vsyncpa [#allocation3], 0  ;;  %1067 = vmatprep.subr.bf16.mxu0 %v1144_v55  ;;  %v1146_v60 = vld [vmem:[%s1467_s1 + $0x140] sm:$0xff]   ;;  %v1151_v0 = vld [vmem:[%s1469_s3 + $0x3c] ss:$28 sps:$4 sm:$0xff]   ;;  %v1207_v7 = vmov 0   ;;  %v619_v41 = vlaneseq }
  0x39   :  { %v1147_v61 = vld [vmem:[%s1467_s1 + $0x100] sm:$0xff]   ;;  %v1149_v1 = vld [vmem:[%s1469_s3 + $0x38] ss:$28 sps:$4 sm:$0xff]   ;;  %v1152_v2 = vld [vmem:[%s1469_s3 + $0x50] ss:$28 sps:$4 sm:$0xff]   ;;  %742 = vmatprep.subr.bf16.mxu1 %v1151_v0  ;;  %762 = vmatprep.mubr.bf16.mxu1 %v1207_v7  ;;  %vm726_vm2 = vcmask 261120  }
  0x3a   :  { %v26_v62 = vld [vmem:[%s1466_s0 + $0x20] sm:$0xff]  ;;  %743 = vmatpush1.bf16.msra.mxu1 %v1149_v1  ;;  %v1156_v5 = vld [vmem:[%s1469_s3 + $0x18] ss:$28 sps:$4 sm:$0xff]   ;;  %v1162_v35 = vld [vmem:[%s1469_s3 + $0xc] ss:$28 sps:$4 sm:$0xff]   ;;  %v620_v42 = vshrl.u32 %v619_v41, 7 }
  0x3b   :  { %1068 = vmatpush3.bf16.msra.mxu0 %v1145_v59  ;;  %v33_v63 = vpack.c.bf16 %v26_v62, %v26_v62  ;;  %v1155_v3 = vld [vmem:[%s1469_s3 + $0x4] ss:$28 sps:$4 sm:$0xff]   ;;  %v1165_v37 = vld [vmem:[%s1469_s3 + $0x4c] ss:$28 sps:$4 sm:$0xff]   ;;  %v1168_v39 = vld [vmem:[%s1469_s3 + $0x14] ss:$28 sps:$4 sm:$0xff]  }
  0x3c   :  { %1069 = vmatprep.subr.bf16.mxu0 %v1146_v60  ;;  %v1153_v4 = vld [vmem:[%s1469_s3] ss:$28 sps:$4 sm:$0xff]   ;;  %744 = vmatprep.subr.bf16.mxu1 %v1155_v3  ;;  %v1160_v36 = vld [vmem:[%s1469_s3 + $0x8] ss:$28 sps:$4 sm:$0xff]   ;;  %v1166_v40 = vld [vmem:[%s1469_s3 + $0x10] ss:$28 sps:$4 sm:$0xff]  }
  0x3d   :  { %v1159_v6 = vld [vmem:[%s1469_s3 + $0x44] ss:$28 sps:$4 sm:$0xff]   ;;  %v621_v43 = vsub.s32 0, %v620_v42  ;;  %v625_v46 = vsub.s32 1, %v620_v42  ;;  %v629_v54 = vsub.s32 2, %v620_v42  ;;  %v633_v60 = vsub.s32 3, %v620_v42 }
  0x3e   :  { %745 = vmatpush1.bf16.msra.mxu1 %v1153_v4  ;;  %v942_v21 = vld [vmem:[%s1468_s2] ss:$0 sm:$0xff]  ;;  %v1163_v38 = vld [vmem:[%s1469_s3 + $0x48] ss:$28 sps:$4 sm:$0xff]  }
  0x3f   :  { %1070 = vmatpush3.bf16.msra.mxu0 %v1147_v61  ;;  %783 = vmatprep.subr.bf16.mxu1 %v1159_v6  ;;  %v1157_v33 = vld [vmem:[%s1469_s3 + $0x40] ss:$28 sps:$4 sm:$0xff]   ;;  %v637_v6 = vsub.s32 4, %v620_v42  ;;  %s1208_s3 = smov [#allocation2]  }
  0x40   :  { %1088 = vmatprep.subr.bf16.mxu0 %v1205_v44  ;;  %v617_v45 = vld [vmem:[%s1470_s4] sm:$0x7f]  ;;  %s934_s4 = sshll.u32 %s1208_s3, 4  ;;  %s935_s4 = int_to_ptr.vmem [resolvable:$true] %s934_s4 }
  0x41   :  { %v622_v47 = vrot.slane %v617_v45, %v621_v43  ;;  %v626_v49 = vrot.slane %v617_v45, %v625_v46  ;;  %v630_v0 = vrot.slane %v617_v45, %v629_v54  ;;  %v634_v3 = vrot.slane %v617_v45, %v633_v60  ;;  %s1183_s1 = scalar_lea.vmem %s935_s4, 896  ;;  %p1188_p1 = scmp.lt.s32.totalorder %s935_s4, %s935_s4 }
  0x42   :  { %552 = vmatmul.mubr.bf16.vlgmr.msra.gmra.mxu0 %v33_v63  ;;  %p1184_p0 = scmp.ne.s32.totalorder %s935_s4, %s1183_s1  ;;  %p1189_p2 = scmp.lt.s32.totalorder %s1183_s1, %s1183_s1 }
  0x43   :  { %1092 = vmatprep.mubr.msk.bf16.mxu0 %vm1206_vm0, %v1205_v44  ;;  %1089 = vmatpush3.bf16.msra.mxu0 %v1152_v2 }
  0x44   :  { %1090 = vmatprep.subr.bf16.mxu0 %v1205_v44  ;;  %v645_v44 = vsub.s32 6, %v620_v42  ;;  %p1190_p3 = por %p1189_p2, %p1188_p1 }
  0x46   :  { %v646_v48 = vrot.slane %v617_v45, %v645_v44  ;;  %p1191_p4 = pnand %p1190_p3, %p1184_p0 }
  0x47   :  { %1091 = vmatpush3.bf16.msra.mxu0 %v1156_v5 }
  0xe2   :  { %v1027_v8 = vpop.f32.mrf.mxu0 }
  0xe4   :  { %v1028_v9 = vpop.f32.mrf.mxu0  ;;  %v1049_v10 = vpop.f32.mrf.mxu1 }
  0xe5   :  { %v1029_v20 = vadd.f32 %v1028_v9, %v1027_v8 }
  0xe6   :  { %v1030_v11 = vpop.f32.mrf.mxu0  ;;  %v1050_v12 = vpop.f32.mrf.mxu1 }
  0xe7   :  { %v474_v22 = vadd.f32 %v1029_v20, %v942_v21  ;;  %v1051_v23 = vadd.f32 %v1050_v12, %v1049_v10  ;;  %v641_v10 = vsub.s32 5, %v620_v42 }
  0xe8   :  { %v1031_v13 = vpop.f32.mrf.mxu0  ;;  %v1052_v14 = vpop.f32.mrf.mxu1 }
  0xe9   :  { %v514_v26 = vadd.f32 %v1051_v23, %v474_v22  ;;  %v638_v13 = vrot.slane %v617_v45, %v637_v6 }
  0xea   :  { %v1053_v15 = vpop.f32.mrf.mxu1 }
  0xeb   :  { %v642_v15 = vrot.slane %v617_v45, %v641_v10 }
  0xec   :  { %v593_v16 = vpop.f32.mrf.mxu1 }
  0xee   :  { %v1086_v17 = vpop.f32.mrf.mxu1 }
  0xf0   :  { %v596_v18 = vpop.f32.mrf.mxu1 }
  0xf2   :  { %v1087_v19 = vpop.f32.mrf.mxu1 }
 0x102   :  { %v1071_v24 = vpop.f32.mrf.mxu0 }
 0x104   :  { %v1072_v25 = vpop.f32.mrf.mxu0 }
 0x105   :  { %v1073_v27 = vadd.f32 %v1072_v25, %v1071_v24 }
 0x106   :  { %v1074_v28 = vpop.f32.mrf.mxu0 }
 0x107   :  { %v554_v29 = vadd.f32 %v1073_v27, %v514_v26 }
 0x108   :  { %v1075_v30 = vpop.f32.mrf.mxu0 }
 0x109   :  { %v594_v31 = vadd.f32 %v593_v16, %v554_v29 }
 0x10b   :  { %v599_v32 = vmax.f32 %v594_v31, 0.0 }
 0x10d   :  { %v600_v34 = vpack.c.bf16 %v599_v32, %v599_v32 }
 0x10f   :  { %1007 = vmatmul.mubr.msk.bf16.vlgmr.msra.gmra.mxu1 %vm726_vm2, %v600_v34  ;;  %1093 = vmatmul.mubr.msk.bf16.vlgmr.msra.gmra.mxu0 %vm726_vm2, %v600_v34 }
 0x110   :  { %784 = vmatpush1.bf16.msra.mxu1 %v1157_v33  ;;  %803 = vmatprep.mubr.bf16.mxu1 %v1207_v7 }
 0x111   :  { %785 = vmatprep.subr.bf16.mxu1 %v1162_v35 }
 0x114   :  { %786 = vmatpush1.bf16.msra.mxu1 %v1160_v36 }
 0x115   :  { %824 = vmatprep.subr.bf16.mxu1 %v1165_v37 }
 0x117   :  { %1008 = vmatmul.mubr.msk.bf16.vlgmr.msra.gmra.mxu1 %vm726_vm2, %v600_v34 }
 0x118   :  { %825 = vmatpush1.bf16.msra.mxu1 %v1163_v38  ;;  %844 = vmatprep.mubr.bf16.mxu1 %v1207_v7 }
 0x119   :  { %826 = vmatprep.subr.bf16.mxu1 %v1168_v39 }
 0x11c   :  { %827 = vmatpush1.bf16.msra.mxu1 %v1166_v40 }
 0x11f   :  { %1009 = vmatmul.mubr.msk.bf16.vlgmr.msra.gmra.mxu1 %vm726_vm2, %v600_v34 }
 0x1cf   :  { %v764_v50 = vpop.f32.mrf.mxu1  ;;  %v887_v51 = vpop.f32.mrf.mxu0 }
 0x1d0   :  { %v765_v52 = vadd.f32 %v764_v50, %v622_v47  ;;  %v888_v53 = vadd.f32 %v887_v51, %v646_v48 }
 0x1d1   :  { %v766_v55 = vpop.f32.mrf.mxu1  ;;  %v1094_v56 = vpop.f32.mrf.mxu0 }
 0x1d2   :  { %v893_v57 = vmul.f32 0.5, %v765_v52  ;;  %v899_v58 = vmul.f32 0.5, %v888_v53  ;;  %v767_v59 = vadd.f32 %v766_v55, %v626_v49 }
 0x1d3   :  { %v768_v61 = vpop.f32.mrf.mxu1  ;;  %v890_v62 = vpop.f32.mrf.mxu0 }
 0x1d4   :  { %1169 = vtanh.f32 %v893_v57  ;;  %v894_v63 = vmul.f32 0.5, %v767_v59 }
 0x1d5   :  { %1171 = vtanh.f32 %v899_v58  ;;  %v769_v1 = vpop.f32.mrf.mxu1  ;;  %v1095_v2 = vpop.f32.mrf.mxu0 }
 0x1d6   :  { %1173 = vtanh.f32 %v894_v63 }
 0x1d7   :  { %v805_v4 = vpop.f32.mrf.mxu1 }
 0x1d8   :  { %v806_v5 = vadd.f32 %v805_v4, %v630_v0 }
 0x1d9   :  { %v807_v7 = vpop.f32.mrf.mxu1 }
 0x1da   :  { %v895_v8 = vmul.f32 0.5, %v806_v5  ;;  %v808_v9 = vadd.f32 %v807_v7, %v634_v3 }
 0x1db   :  { %v809_v11 = vpop.f32.mrf.mxu1 }
 0x1dc   :  { %1175 = vtanh.f32 %v895_v8  ;;  %v896_v12 = vmul.f32 0.5, %v808_v9 }
 0x1dd   :  { %v810_v14 = vpop.f32.mrf.mxu1 }
 0x1de   :  { %1177 = vtanh.f32 %v896_v12 }
 0x1df   :  { %v846_v16 = vpop.f32.mrf.mxu1 }
 0x1e0   :  { %v847_v17 = vadd.f32 %v846_v16, %v638_v13 }
 0x1e1   :  { %v1170_v18 = vpop.eup %1169  ;;  %v848_v19 = vpop.f32.mrf.mxu1 }
 0x1e2   :  { %v1172_v20 = vpop.eup %1171  ;;  %v907_v21 = vmul.f32 0.5, %v1170_v18  ;;  %v897_v22 = vmul.f32 0.5, %v847_v17  ;;  %v849_v23 = vadd.f32 %v848_v19, %v642_v15 }
 0x1e3   :  { %v1174_v24 = vpop.eup %1173  ;;  %v913_v25 = vmul.f32 0.5, %v1172_v20  ;;  %v850_v26 = vpop.f32.mrf.mxu1 }
 0x1e4   :  { %v914_v27 = vadd.f32 0.5, %v907_v21  ;;  %v908_v28 = vmul.f32 0.5, %v1174_v24  ;;  %1179 = vtanh.f32 %v897_v22  ;;  %v898_v29 = vmul.f32 0.5, %v849_v23 }
 0x1e5   :  { %v920_v30 = vadd.f32 0.5, %v913_v25  ;;  %v851_v31 = vpop.f32.mrf.mxu1 }
 0x1e6   :  { %921 = vst [vmem:[#allocation2] sm:$0xff] %v914_v27  ;;  %v915_v32 = vadd.f32 0.5, %v908_v28  ;;  %1181 = vtanh.f32 %v898_v29 }
 0x1e7   :  { %927 = vst.msk [vmem:[#allocation2 + $0x30] sm:$0xff] %vm435_vm1, %v920_v30 }
 0x1e8   :  { %922 = vst [vmem:[#allocation2 + $0x8] sm:$0xff] %v915_v32 }
 0x1e9   :  { %v1176_v33 = vpop.eup %1175 }
 0x1ea   :  { %v909_v34 = vmul.f32 0.5, %v1176_v33 }
 0x1eb   :  { %v1178_v35 = vpop.eup %1177 }
 0x1ec   :  { %v916_v36 = vadd.f32 0.5, %v909_v34  ;;  %v910_v37 = vmul.f32 0.5, %v1178_v35 }
 0x1ee   :  { %923 = vst [vmem:[#allocation2 + $0x10] sm:$0xff] %v916_v36  ;;  %v917_v38 = vadd.f32 0.5, %v910_v37 }
 0x1f0   :  { %924 = vst [vmem:[#allocation2 + $0x18] sm:$0xff] %v917_v38 }
 0x1f1   :  { %v1180_v39 = vpop.eup %1179 }
 0x1f2   :  { %v911_v40 = vmul.f32 0.5, %v1180_v39 }
 0x1f3   :  { %v1182_v41 = vpop.eup %1181 }
 0x1f4   :  { %v918_v42 = vadd.f32 0.5, %v911_v40  ;;  %v912_v43 = vmul.f32 0.5, %v1182_v41 }
 0x1f6   :  { %925 = vst [vmem:[#allocation2 + $0x20] sm:$0xff] %v918_v42  ;;  %v919_v44 = vadd.f32 0.5, %v912_v43 }
 0x1f8   :  { %926 = vst [vmem:[#allocation2 + $0x28] sm:$0xff] %v919_v44 }
 0x1f9   :  { %1194 = shalt.err (!%p1191_p4)
}
 0x1fa   :  { %937 = dma.vmem_to_hbm [thread:$0]  %s935_s4, 896, %s1471_s5, [#allocation3]  }
 0x1fb   :  { %1203 = dma.done.wait [#allocation3], 896  }
 0x1fc   :  { %1204 = vsyncadd [#allocation3], 4294966400 }
 0x1fd   :  { %941 = vsyncpa [#allocation3], 1 }

</bundles_post_ra>
